<compile_context>
chip_gen: v6e
topology: v6e:2x2x1
jax: 0.10.0
libtpu: 0.0.40
codegen_flags: <defaults>
</compile_context>

<pallas_src>
import jax
import jax.numpy as jnp
from jax.experimental import pallas as pl
from jax.experimental.pallas import tpu as pltpu

_LANE = 128                 # lane tile
_SUB = 8                    # f32 sublane tile (accumulator shape)
_DEFAULT_BLOCK_ROWS = 4096  # 4096x128 f32 = 2 MiB / block / input


def _detect_num_tensorcores() -> int:
    """Conservative TensorCore-count query; falls back to 1 (always correct)."""
    try:
        info = pltpu.get_tpu_info()
        for name in ("num_cores", "core_count", "num_tensorcores",
                     "tensorcore_count"):
            v = getattr(info, name, None)
            if isinstance(v, int) and v >= 1:
                return v
    except Exception:
        pass
    return 1


def _make_mse_kernel(rows: int, blk: int, per_core: int,
                     has_core_axis: bool, need_mask: bool):
    """Kernel accumulating an (8,128) partial sum of (x - t)^2 per core."""
    red_axis = 1 if has_core_axis else 0

    def kernel(x_ref, t_ref, out_ref):
        @pl.when(pl.program_id(red_axis) == 0)
        def _():
            out_ref[...] = jnp.zeros_like(out_ref)

        # Upcast once for accumulation (also required on v5e: no bf16 VALU).
        x = x_ref[...].astype(jnp.float32)
        t = t_ref[...].astype(jnp.float32)

        def accumulate(sq):
            # Streaming vreg-add reduce of the block to a single (8,128) tile
            # (tile-aligned split of the sublane-major dim -> plain VPU adds).
            partial = sq.reshape(blk // _SUB, _SUB, _LANE).sum(axis=0)
            if has_core_axis:
                partial = partial[None, :, :]
            out_ref[...] += partial

        if not need_mask:
            # Fast path: every block is fully in-range -> no iota/compare/select.
            d = x - t
            accumulate(d * d)
        else:
            # Virtual (unclamped) global row offset of this block.  Clamped /
            # duplicated blocks (index_map pins them to the last real block)
            # get row0 >= rows, so the mask zeroes their entire contribution.
            if has_core_axis:
                row0 = (pl.program_id(0) * per_core + pl.program_id(1)) * blk
            else:
                row0 = pl.program_id(0) * blk
            full_block = row0 + blk <= rows

            @pl.when(full_block)
            def _():
                d = x - t
                accumulate(d * d)

            @pl.when(jnp.logical_not(full_block))
            def _():
                local = jax.lax.broadcasted_iota(jnp.int32, (blk, _LANE), 0)
                valid = (row0 + local) < rows
                # Select BEFORE square/reduce (correctness invariant: garbage
                # rows in the clipped DMA must never reach the accumulator).
                d = jnp.where(valid, x - t, 0.0)
                accumulate(d * d)

    return kernel


def content_loss_forward(input1: jax.Array, target: jax.Array,
                         *, block_rows: int = _DEFAULT_BLOCK_ROWS,
                         num_cores: int | None = None):
    """Returns (input1, loss) where loss = mean((input1 - target)**2)."""
    assert input1.shape == target.shape
    n_elems = input1.size
    if num_cores is None:
        num_cores = _detect_num_tensorcores()

    acc_dtype = jnp.float32
    xf = input1.reshape(-1)   # contiguous reshape: no HBM copy
    tf = target.reshape(-1)

    rows = n_elems // _LANE
    rem = n_elems - rows * _LANE

    tail_sse = jnp.zeros((), acc_dtype)
    if rem:
        # Tiny (<128-element) ragged lane tail: plain JAX, negligible cost.
        tx = jax.lax.slice(xf, (rows * _LANE,), (n_elems,)).astype(acc_dtype)
        tt = jax.lax.slice(tf, (rows * _LANE,), (n_elems,)).astype(acc_dtype)
        tail_sse = jnp.sum((tx - tt) ** 2)
        # TODO(synk): the full-lane prefix slice below still materializes one
        # copy of each input in the (rare) non-multiple-of-128 case; a flat
        # 1-D BlockSpec path could avoid it entirely.
        xf = jax.lax.slice(xf, (0,), (rows * _LANE,))
        tf = jax.lax.slice(tf, (0,), (rows * _LANE,))

    if rows == 0:
        # Entire input is smaller than one lane row.
        return input1, tail_sse / jnp.float32(n_elems)

    x2 = xf.reshape(rows, _LANE)
    t2 = tf.reshape(rows, _LANE)

    itemsize = x2.dtype.itemsize
    # Sublane packing requirement of the *input* dtype for the block row dim.
    sub_req = {4: 8, 2: 16, 1: 32}.get(itemsize, _SUB)
    # Same VMEM footprint regardless of dtype: narrower dtypes get more rows.
    eff_block_rows = block_rows * max(1, 4 // itemsize)
    blk = min(eff_block_rows, ((rows + sub_req - 1) // sub_req) * sub_req)
    n_blocks = pl.cdiv(rows, blk)

    has_core_axis = (num_cores > 1) and (n_blocks >= num_cores)

    if has_core_axis:
        per_core = pl.cdiv(n_blocks, num_cores)
        need_mask = (rows % blk != 0) or (n_blocks % num_cores != 0)
        grid = (num_cores, per_core)

        def in_map(c, i):
            # Clamp so no DMA targets a block fully past the array end (only
            # when n_blocks % num_cores != 0); the kernel's virtual-row mask
            # discards the duplicated contribution.
            return (jnp.minimum(c * per_core + i, n_blocks - 1), 0)

        out_spec = pl.BlockSpec((1, _SUB, _LANE), lambda c, i: (c, 0, 0))
        out_shape = jax.ShapeDtypeStruct((num_cores, _SUB, _LANE), acc_dtype)
        dim_sem = (pltpu.CORE_PARALLEL, pltpu.ARBITRARY)
        out_slots = num_cores
    else:
        per_core = n_blocks
        need_mask = (rows % blk) != 0
        grid = (n_blocks,)

        def in_map(i):
            return (i, 0)

        out_spec = pl.BlockSpec((_SUB, _LANE), lambda i: (0, 0))
        out_shape = jax.ShapeDtypeStruct((_SUB, _LANE), acc_dtype)
        dim_sem = (pltpu.ARBITRARY,)
        out_slots = 1

    kernel = _make_mse_kernel(rows, blk, per_core, has_core_axis, need_mask)

    bytes_in = 2 * rows * _LANE * itemsize
    cost = pl.CostEstimate(
        flops=3 * n_elems,                                  # sub, mul, add
        transcendentals=0,
        bytes_accessed=bytes_in + out_slots * _SUB * _LANE * 4,
    )

    partials = pl.pallas_call(
        kernel,
        out_shape=out_shape,
        grid_spec=pltpu.PrefetchScalarGridSpec(
            num_scalar_prefetch=0,
            grid=grid,
            in_specs=[
                pl.BlockSpec((blk, _LANE), in_map),
                pl.BlockSpec((blk, _LANE), in_map),
            ],
            out_specs=out_spec,
        ),
        compiler_params=pltpu.CompilerParams(dimension_semantics=dim_sem),
        cost_estimate=cost,
    )(x2, t2)

    # One-time epilogue: cross-lane reduce of the few (8,128) partials + mean.
    loss = (jnp.sum(partials) + tail_sse) / jnp.float32(n_elems)

    # forward() returns the input unchanged; loss is a side value (no module
    # attribute state in JAX).
    return input1, loss


if __name__ == "__main__":
    key = jax.random.PRNGKey(0)
    k_x, k_t = jax.random.split(key)

    # Small NCHW feature maps, consistent with what a VGG content layer sees.
    x = jax.random.normal(k_x, (2, 4, 16, 16), dtype=jnp.float32)
    target = jax.random.normal(k_t, (2, 4, 16, 16), dtype=jnp.float32)

    out, loss = jax.jit(content_loss_forward)(x, target)
    jax.block_until_ready((out, loss))

    # Sanity check against plain-JAX reference.
    ref_loss = jnp.mean((x - target) ** 2)
    assert jnp.allclose(loss, ref_loss, rtol=1e-5, atol=1e-6), (loss, ref_loss)
    assert jnp.array_equal(out, x)

    # Exercise the masked-tail path (rows % blk != 0 and a <128-elem lane tail).
    xr = jax.random.normal(k_x, (3, 5, 7, 11), dtype=jnp.float32)
    tr = jax.random.normal(k_t, (3, 5, 7, 11), dtype=jnp.float32)
    out_r, loss_r = jax.jit(content_loss_forward)(xr, tr)
    jax.block_until_ready((out_r, loss_r))
    assert jnp.allclose(loss_r, jnp.mean((xr - tr) ** 2), rtol=1e-5, atol=1e-6)
    assert jnp.array_equal(out_r, xr)

    print("KERNEL_OK")
</pallas_src>

<mosaic_0001>
module attributes {stable_mosaic.version = 11 : i64} {
  func.func @kernel(%arg0: i32, %arg1: memref<16x128xf32, #tpu.memory_space<vmem>>, %arg2: memref<16x128xf32, #tpu.memory_space<vmem>>, %arg3: memref<8x128xf32, #tpu.memory_space<vmem>>) attributes {dimension_semantics = [#tpu.dimension_semantics<arbitrary>], iteration_bounds = array<i64: 1>, scalar_prefetch = 0 : i64, scratch_operands = 0 : i64, tpu.core_type = #tpu.core_type<tc>, window_params = [{transform_indices = @transform_0, window_bounds = array<i64: 16, 128>}, {transform_indices = @transform_1, window_bounds = array<i64: 16, 128>}, {pipeline_mode = #tpu.pipeline_mode<synchronous>, transform_indices = @transform_2, window_bounds = array<i64: 8, 128>}]} {
    %c0_i32 = arith.constant 0 : i32
    %0 = arith.cmpi eq, %arg0, %c0_i32 : i32
    %1 = arith.extui %0 : i1 to i32
    %c0_i32_0 = arith.constant 0 : i32
    %2 = arith.cmpi ne, %1, %c0_i32_0 : i32
    scf.if %2 {
      %cst_8 = arith.constant 0.000000e+00 : f32
      %12 = vector.broadcast %cst_8 : f32 to vector<8x128xf32>
      %c0_9 = arith.constant 0 : index
      %c0_10 = arith.constant 0 : index
      %13 = vector.load %arg3[%c0_9, %c0_10] : memref<8x128xf32, #tpu.memory_space<vmem>>, vector<8x128xf32>
      tpu.vector_store %arg3[%c0_9, %c0_10], %12 {strides = array<i32>} : memref<8x128xf32, #tpu.memory_space<vmem>>, vector<8x128xf32>,
    } else {
    }
    %c0 = arith.constant 0 : index
    %c0_1 = arith.constant 0 : index
    %3 = vector.load %arg1[%c0, %c0_1] : memref<16x128xf32, #tpu.memory_space<vmem>>, vector<16x128xf32>
    %c0_2 = arith.constant 0 : index
    %c0_3 = arith.constant 0 : index
    %4 = vector.load %arg2[%c0_2, %c0_3] : memref<16x128xf32, #tpu.memory_space<vmem>>, vector<16x128xf32>
    %5 = arith.subf %3, %4 : vector<16x128xf32>
    %6 = arith.mulf %5, %5 : vector<16x128xf32>
    %7 = vector.shape_cast %6 : vector<16x128xf32> to vector<2x8x128xf32>
    %cst = arith.constant dense<0.000000e+00> : vector<8x128xf32>
    %8 = vector.multi_reduction <add>, %7, %cst [0] : vector<2x8x128xf32> to vector<8x128xf32>
    %c0_4 = arith.constant 0 : index
    %c0_5 = arith.constant 0 : index
    %9 = vector.load %arg3[%c0_4, %c0_5] : memref<8x128xf32, #tpu.memory_space<vmem>>, vector<8x128xf32>
    %10 = arith.addf %9, %8 : vector<8x128xf32>
    %c0_6 = arith.constant 0 : index
    %c0_7 = arith.constant 0 : index
    %11 = vector.load %arg3[%c0_6, %c0_7] : memref<8x128xf32, #tpu.memory_space<vmem>>, vector<8x128xf32>
    tpu.vector_store %arg3[%c0_6, %c0_7], %10 {strides = array<i32>} : memref<8x128xf32, #tpu.memory_space<vmem>>, vector<8x128xf32>,
    return
  }
  func.func @transform_0(%arg0: i32) -> (i32, i32) {
    %c0_i32 = arith.constant 0 : i32
    %c0_i32_0 = arith.constant 0 : i32
    return %arg0, %c0_i32 : i32, i32
  }
  func.func @transform_1(%arg0: i32) -> (i32, i32) {
    %c0_i32 = arith.constant 0 : i32
    %c0_i32_0 = arith.constant 0 : i32
    return %arg0, %c0_i32 : i32, i32
  }
  func.func @transform_2(%arg0: i32) -> (i32, i32) {
    %c0_i32 = arith.constant 0 : i32
    %c0_i32_0 = arith.constant 0 : i32
    %c0_i32_1 = arith.constant 0 : i32
    return %c0_i32, %c0_i32_0 : i32, i32
  }
}

</mosaic_0001>

<bundles_post_ra>
// kernel: content_loss_forward.1
= control target key start
LH: loop header
LB: loop body
LE: loop exit
PB: predicated region body
PF: predicated region fallthrough
CT: control target
= control target key end

     0   :  { %s63_s0 = inlined_call_operand.vmem [shape: f32[16,128], index: 0, kind: input, shape index: {}]   ;;  %s64_s1 = inlined_call_operand.vmem [shape: f32[16,128], index: 1, kind: input, shape index: {}]   ;;  %s65_s2 = inlined_call_operand.vmem [shape: f32[8,128], index: 2, kind: output, shape index: {}]  }
   0x1   :  { %v16_v0 = vld [vmem:[%s63_s0] sm:$0xff]  ;;  %v17_v1 = vld [vmem:[%s63_s0 + $0x8] sm:$0xff] }
   0x2   :  { %v18_v2 = vld [vmem:[%s64_s1] sm:$0xff]  ;;  %v19_v3 = vld [vmem:[%s64_s1 + $0x8] sm:$0xff] }
   0x3   :  { %v20_v4 = vsub.f32 %v16_v0, %v18_v2  ;;  %v21_v5 = vsub.f32 %v17_v1, %v19_v3 }
   0x5   :  { %v22_v6 = vmul.f32 %v20_v4, %v20_v4  ;;  %v23_v7 = vmul.f32 %v21_v5, %v21_v5 }
   0x7   :  { %v24_v8 = vadd.f32 %v23_v7, %v22_v6 }
   0x9   :  { %27 = vst [vmem:[%s65_s2] sm:$0xff] %v24_v8 }

</bundles_post_ra>
